<compile_context>
chip_gen: v6e
topology: v6e:2x2x1
jax: 0.10.0
libtpu: 0.0.40
codegen_flags: <defaults>
</compile_context>

<pallas_src>
import math

import jax
import jax.numpy as jnp
from jax.experimental import pallas as pl
from jax.experimental.pallas import tpu as pltpu


def _fc_l2norm_kernel(x_ref, w_ref, b_ref, out_ref):
    """One (tm, D) row tile: y = x @ W + b, L2-normalize each row, single store."""
    y = jnp.dot(x_ref[...], w_ref[...], preferred_element_type=jnp.float32)   # (tm, E) MXU
    y = y + b_ref[...]                                                        # (tm, E) + (1, E)
    # l2norm: X / (sqrt(sum(X^2, -1)) + eps) -- same eps placement as the PyTorch reference.
    norm = jnp.sqrt(jnp.sum(y * y, axis=-1, keepdims=True)) + 1e-8            # (tm, 1)
    out_ref[...] = (y * pl.reciprocal(norm)).astype(out_ref.dtype)            # lane-dense store


def _round_up(x, m):
    return ((x + m - 1) // m) * m


def init_params(key, img_dim, embed_size):
    """Xavier-uniform FC weight (as in EncoderImage.init_weights), zero bias.

    Weight is stored already transposed, (img_dim, embed_size), so the kernel does x @ W.
    """
    r = math.sqrt(6.0) / math.sqrt(img_dim + embed_size)
    w = jax.random.uniform(key, (img_dim, embed_size), jnp.float32, -r, r)
    b = jnp.zeros((1, embed_size), jnp.float32)
    return {"w": w, "b": b}


def encoder_image_forward(images, params, *, block_m=512):
    """images: (B, R, img_dim) float -> (B, R, embed_size) L2-normalized embeddings."""
    W = params["w"]                      # (D, E)
    b = params["b"]                      # (1, E)
    B, R, D = images.shape
    E = W.shape[1]

    # Flatten batch * regions into rows; tile rows only (feature dims stay whole/lane-dense).
    x = images.reshape(B * R, D).astype(jnp.float32)
    M = x.shape[0]

    tm = min(block_m, _round_up(M, 8))   # 8-sublane aligned row tile
    M_pad = _round_up(M, tm)
    if M_pad != M:
        x = jnp.pad(x, ((0, M_pad - M), (0, 0)))

    out = pl.pallas_call(
        _fc_l2norm_kernel,
        out_shape=jax.ShapeDtypeStruct((M_pad, E), jnp.float32),
        grid=(M_pad // tm,),
        in_specs=[
            pl.BlockSpec((tm, D), lambda i: (i, 0)),     # row tile of flattened regions
            pl.BlockSpec((D, E), lambda i: (0, 0)),      # weight: VMEM-resident across grid
            pl.BlockSpec((1, E), lambda i: (0, 0)),      # bias:   VMEM-resident across grid
        ],
        out_specs=pl.BlockSpec((tm, E), lambda i: (i, 0)),
        compiler_params=pltpu.CompilerParams(
            dimension_semantics=("parallel",),           # shard row tiles across TensorCores
            vmem_limit_bytes=48 * 1024 * 1024,           # explicit, with headroom for v7x (64 MiB)
        ),
    )(x, W, b)

    return out[:M].reshape(B, R, E)


if __name__ == "__main__":
    # Small config consistent with EncoderImage(img_dim, embed_size): (B, 36, img_dim) in,
    # (B, 36, embed_size) out.  Real sizes are 2048 -> 1024; small stand-ins here.
    B, R = 2, 36
    img_dim, embed_size = 512, 256

    key = jax.random.PRNGKey(0)
    pk, xk = jax.random.split(key)
    params = init_params(pk, img_dim, embed_size)
    images = jax.random.normal(xk, (B, R, img_dim), dtype=jnp.float32)

    out = encoder_image_forward(images, params)
    jax.block_until_ready(out)

    # Plain-JAX reference check (same math as the PyTorch forward).
    ref = images @ params["w"] + params["b"][0]
    ref = ref / (jnp.sqrt(jnp.sum(ref * ref, axis=-1, keepdims=True)) + 1e-8)

    assert out.shape == (B, R, embed_size)
    assert jnp.allclose(out, ref, atol=1e-4, rtol=1e-4)
    print("KERNEL_OK")
</pallas_src>

<mosaic_0001>
module attributes {stable_mosaic.version = 11 : i64} {
  func.func @_fc_l2norm_kernel(%arg0: i32, %arg1: memref<72x512xf32, #tpu.memory_space<vmem>>, %arg2: memref<512x256xf32, #tpu.memory_space<vmem>>, %arg3: memref<1x256xf32, #tpu.memory_space<vmem>>, %arg4: memref<72x256xf32, #tpu.memory_space<vmem>>) attributes {dimension_semantics = [#tpu.dimension_semantics<parallel>], iteration_bounds = array<i64: 1>, scalar_prefetch = 0 : i64, scratch_operands = 0 : i64, tpu.core_type = #tpu.core_type<tc>, window_params = [{transform_indices = @transform_0, window_bounds = array<i64: 72, 512>}, {pipeline_mode = #tpu.pipeline_mode<synchronous>, transform_indices = @transform_1, window_bounds = array<i64: 512, 256>}, {pipeline_mode = #tpu.pipeline_mode<synchronous>, transform_indices = @transform_2, window_bounds = array<i64: 1, 256>}, {transform_indices = @transform_3, window_bounds = array<i64: 72, 256>}]} {
    %c0 = arith.constant 0 : index
    %c0_0 = arith.constant 0 : index
    %0 = vector.load %arg1[%c0, %c0_0] : memref<72x512xf32, #tpu.memory_space<vmem>>, vector<72x512xf32>
    %c0_1 = arith.constant 0 : index
    %c0_2 = arith.constant 0 : index
    %1 = vector.load %arg2[%c0_1, %c0_2] : memref<512x256xf32, #tpu.memory_space<vmem>>, vector<512x256xf32>
    %cst = arith.constant dense<0.000000e+00> : vector<72x256xf32>
    %2 = tpu.matmul %0, %1, %cst {dimension_numbers = #tpu.dot_dimension_numbers<[1], [0], [0], [1], [0, 0, 1, 1], [], []>} : vector<72x512xf32>, vector<512x256xf32>, vector<72x256xf32> -> vector<72x256xf32>
    %c0_3 = arith.constant 0 : index
    %c0_4 = arith.constant 0 : index
    %3 = vector.load %arg3[%c0_3, %c0_4] : memref<1x256xf32, #tpu.memory_space<vmem>>, vector<1x256xf32>
    %4 = vector.broadcast %3 : vector<1x256xf32> to vector<72x256xf32>
    %5 = arith.addf %2, %4 : vector<72x256xf32>
    %6 = arith.mulf %5, %5 : vector<72x256xf32>
    %cst_5 = arith.constant dense<0.000000e+00> : vector<72xf32>
    %7 = vector.multi_reduction <add>, %6, %cst_5 [1] : vector<72x256xf32> to vector<72xf32>
    %8 = vector.shape_cast %7 : vector<72xf32> to vector<72x1xf32>
    %9 = math.sqrt %8 : vector<72x1xf32>
    %cst_6 = arith.constant 9.99999993E-9 : f32
    %10 = vector.broadcast %cst_6 : f32 to vector<72x1xf32>
    %11 = arith.addf %9, %10 : vector<72x1xf32>
    %12 = tpu.reciprocal %11 : vector<72x1xf32> -> vector<72x1xf32>
    %13 = vector.broadcast %12 : vector<72x1xf32> to vector<72x256xf32>
    %14 = arith.mulf %5, %13 : vector<72x256xf32>
    %c0_7 = arith.constant 0 : index
    %c0_8 = arith.constant 0 : index
    %15 = vector.load %arg4[%c0_7, %c0_8] : memref<72x256xf32, #tpu.memory_space<vmem>>, vector<72x256xf32>
    tpu.vector_store %arg4[%c0_7, %c0_8], %14 {strides = array<i32>} : memref<72x256xf32, #tpu.memory_space<vmem>>, vector<72x256xf32>,
    return
  }
  func.func @transform_0(%arg0: i32) -> (i32, i32) {
    %c0_i32 = arith.constant 0 : i32
    %c0_i32_0 = arith.constant 0 : i32
    return %arg0, %c0_i32 : i32, i32
  }
  func.func @transform_1(%arg0: i32) -> (i32, i32) {
    %c0_i32 = arith.constant 0 : i32
    %c0_i32_0 = arith.constant 0 : i32
    %c0_i32_1 = arith.constant 0 : i32
    return %c0_i32, %c0_i32_0 : i32, i32
  }
  func.func @transform_2(%arg0: i32) -> (i32, i32) {
    %c0_i32 = arith.constant 0 : i32
    %c0_i32_0 = arith.constant 0 : i32
    %c0_i32_1 = arith.constant 0 : i32
    return %c0_i32, %c0_i32_0 : i32, i32
  }
  func.func @transform_3(%arg0: i32) -> (i32, i32) {
    %c0_i32 = arith.constant 0 : i32
    %c0_i32_0 = arith.constant 0 : i32
    return %arg0, %c0_i32 : i32, i32
  }
}

</mosaic_0001>

<bundles_post_ra>
// kernel: tpu_custom_call.1
= control target key start
LH: loop header
LB: loop body
LE: loop exit
PB: predicated region body
PF: predicated region fallthrough
CT: control target
= control target key end

     0   :  { %8 = vsyncpa [#allocation3], 0  ;;  %s919_s0 = inlined_call_operand.hbm [shape: f32[72,512], index: 0, kind: input, shape index: {}]   ;;  %s920_s1 = inlined_call_operand.hbm [shape: f32[512,256], index: 1, kind: input, shape index: {}]   ;;  %s921_s2 = inlined_call_operand.vmem [shape: f32[1,256], index: 2, kind: input, shape index: {}]   ;;  %s922_s3 = inlined_call_operand.hbm [shape: f32[72,256], index: 3, kind: output, shape index: {}]  }
   0x1   :  { %9 = vsyncpa [#allocation6], 0 }
   0x2   :  { %10 = vsyncpa [#allocation4], 0  ;;  %s746_s12 = smov [#allocation2]  }
   0x3   :  { %s16_s13 = sshll.u32 %s746_s12, 4  ;;  %s17_s13 = int_to_ptr.vmem [resolvable:$true] %s16_s13 }
   0x4   :  { %s688_s14 = scalar_lea.vmem %s17_s13, 4608  ;;  %p693_p1 = scmp.lt.s32.totalorder %s17_s13, %s17_s13 }
   0x5   :  { %p689_p0 = scmp.ne.s32.totalorder %s17_s13, %s688_s14  ;;  %p694_p2 = scmp.lt.s32.totalorder %s688_s14, %s688_s14 }
   0x7   :  { %p695_p3 = por %p694_p2, %p693_p1 }
   0x9   :  { %p696_p4 = pnand %p695_p3, %p689_p0 }
   0xb   :  { %699 = shalt.err (!%p696_p4)
}
   0xc   :  { %s747_s15 = smov 512   ;;  %s748_s16 = smov 32  }
   0xd   :  { %22 = dma.hbm_to_vmem [thread:$0]  %s919_s0, 4608, %s17_s13, [#allocation3], %s747_s15, %s747_s15, %s748_s16  }
   0xe   :  { %s749_s19 = smov [#allocation5]  }
   0xf   :  { %s28_s20 = sshll.u32 %s749_s19, 4  ;;  %s29_s20 = int_to_ptr.vmem [resolvable:$true] %s28_s20 }
  0x10   :  { %s708_s21 = scalar_lea.vmem %s29_s20, 16384  ;;  %p713_p6 = scmp.lt.s32.totalorder %s29_s20, %s29_s20 }
  0x11   :  { %p709_p5 = scmp.ne.s32.totalorder %s29_s20, %s708_s21  ;;  %p714_p7 = scmp.lt.s32.totalorder %s708_s21, %s708_s21 }
  0x13   :  { %p715_p8 = por %p714_p7, %p713_p6 }
  0x15   :  { %p716_p9 = pnand %p715_p8, %p709_p5 }
  0x17   :  { %719 = shalt.err (!%p716_p9)
}
  0x18   :  { %s750_s22 = smov 256   ;;  %s751_s23 = smov 16  }
  0x19   :  { %34 = dma.hbm_to_vmem [thread:$0]  %s920_s1, 16384, %s29_s20, [#allocation6], %s750_s22, %s750_s22, %s751_s23  }
  0x1a   :  { %740 = dma.done.wait [#allocation3], 4608  }
  0x1b   :  { %741 = vsyncadd [#allocation3], 4294962688 }
  0x1c   :  { %742 = dma.done.wait [#allocation6], 16384  }
  0x1d   :  { %743 = vsyncadd [#allocation6], 4294950912  ;;  %v110_v0 = vld [vmem:[#allocation5 + $0xf8] sm:$0xff]  ;;  %v109_v2 = vld [vmem:[#allocation5 + $0xf0] sm:$0xff] }
  0x1e   :  { %v174_v1 = vld [vmem:[#allocation5 + $0x2f8] sm:$0xff]  ;;  %219 = vmatprep.subr.mxu0 %v110_v0  ;;  %v173_v3 = vld [vmem:[#allocation5 + $0x2f0] sm:$0xff]  ;;  %v108_v4 = vld [vmem:[#allocation5 + $0xe8] sm:$0xff] }
  0x1f   :  { %338 = vmatprep.subr.mxu1 %v174_v1  ;;  %v172_v5 = vld [vmem:[#allocation5 + $0x2e8] sm:$0xff]  ;;  %220 = vmatpush1.msra.mxu0 %v109_v2  ;;  %v107_v6 = vld [vmem:[#allocation5 + $0xe0] sm:$0xff]  ;;  %v106_v8 = vld [vmem:[#allocation5 + $0xd8] sm:$0xff] }
  0x20   :  { %339 = vmatpush1.msra.mxu1 %v173_v3  ;;  %v171_v7 = vld [vmem:[#allocation5 + $0x2e0] sm:$0xff]  ;;  %221 = vmatprep.subr.mxu0 %v108_v4  ;;  %v170_v9 = vld [vmem:[#allocation5 + $0x2d8] sm:$0xff]  ;;  %v105_v10 = vld [vmem:[#allocation5 + $0xd0] sm:$0xff] }
  0x21   :  { %340 = vmatprep.subr.mxu1 %v172_v5  ;;  %v169_v11 = vld [vmem:[#allocation5 + $0x2d0] sm:$0xff]  ;;  %222 = vmatpush1.msra.mxu0 %v107_v6  ;;  %v104_v12 = vld [vmem:[#allocation5 + $0xc8] sm:$0xff]  ;;  %v103_v14 = vld [vmem:[#allocation5 + $0xc0] sm:$0xff] }
  0x22   :  { %341 = vmatpush1.msra.mxu1 %v171_v7  ;;  %v168_v13 = vld [vmem:[#allocation5 + $0x2c8] sm:$0xff]  ;;  %223 = vmatprep.subr.mxu0 %v106_v8  ;;  %v167_v15 = vld [vmem:[#allocation5 + $0x2c0] sm:$0xff]  ;;  %v102_v16 = vld [vmem:[#allocation5 + $0xb8] sm:$0xff] }
  0x23   :  { %342 = vmatprep.subr.mxu1 %v170_v9  ;;  %224 = vmatpush1.msra.mxu0 %v105_v10  ;;  %v166_v17 = vld [vmem:[#allocation5 + $0x2b8] sm:$0xff]  ;;  %v101_v18 = vld [vmem:[#allocation5 + $0xb0] sm:$0xff]  ;;  %v100_v20 = vld [vmem:[#allocation5 + $0xa8] sm:$0xff] }
  0x24   :  { %343 = vmatpush1.msra.mxu1 %v169_v11  ;;  %225 = vmatprep.subr.mxu0 %v104_v12  ;;  %v165_v19 = vld [vmem:[#allocation5 + $0x2b0] sm:$0xff]  ;;  %v164_v21 = vld [vmem:[#allocation5 + $0x2a8] sm:$0xff]  ;;  %v99_v22 = vld [vmem:[#allocation5 + $0xa0] sm:$0xff] }
  0x25   :  { %344 = vmatprep.subr.mxu1 %v168_v13  ;;  %226 = vmatpush1.msra.mxu0 %v103_v14  ;;  %v163_v23 = vld [vmem:[#allocation5 + $0x2a0] sm:$0xff]  ;;  %v98_v24 = vld [vmem:[#allocation5 + $0x98] sm:$0xff]  ;;  %v97_v26 = vld [vmem:[#allocation5 + $0x90] sm:$0xff] }
  0x26   :  { %345 = vmatpush1.msra.mxu1 %v167_v15  ;;  %227 = vmatprep.subr.mxu0 %v102_v16  ;;  %v162_v25 = vld [vmem:[#allocation5 + $0x298] sm:$0xff]  ;;  %v161_v27 = vld [vmem:[#allocation5 + $0x290] sm:$0xff]  ;;  %v96_v28 = vld [vmem:[#allocation5 + $0x88] sm:$0xff] }
  0x27   :  { %346 = vmatprep.subr.mxu1 %v166_v17  ;;  %228 = vmatpush1.msra.mxu0 %v101_v18  ;;  %v160_v29 = vld [vmem:[#allocation5 + $0x288] sm:$0xff]  ;;  %v95_v30 = vld [vmem:[#allocation5 + $0x80] sm:$0xff]  ;;  %v94_v32 = vld [vmem:[#allocation5 + $0x78] sm:$0xff] }
  0x28   :  { %347 = vmatpush1.msra.mxu1 %v165_v19  ;;  %229 = vmatprep.subr.mxu0 %v100_v20  ;;  %v159_v31 = vld [vmem:[#allocation5 + $0x280] sm:$0xff]  ;;  %v158_v33 = vld [vmem:[#allocation5 + $0x278] sm:$0xff]  ;;  %v93_v34 = vld [vmem:[#allocation5 + $0x70] sm:$0xff] }
  0x29   :  { %348 = vmatprep.subr.mxu1 %v164_v21  ;;  %230 = vmatpush1.msra.mxu0 %v99_v22  ;;  %v157_v35 = vld [vmem:[#allocation5 + $0x270] sm:$0xff]  ;;  %v92_v36 = vld [vmem:[#allocation5 + $0x68] sm:$0xff]  ;;  %v91_v38 = vld [vmem:[#allocation5 + $0x60] sm:$0xff] }
  0x2a   :  { %349 = vmatpush1.msra.mxu1 %v163_v23  ;;  %231 = vmatprep.subr.mxu0 %v98_v24  ;;  %v156_v37 = vld [vmem:[#allocation5 + $0x268] sm:$0xff]  ;;  %v155_v39 = vld [vmem:[#allocation5 + $0x260] sm:$0xff]  ;;  %v90_v40 = vld [vmem:[#allocation5 + $0x58] sm:$0xff] }
  0x2b   :  { %350 = vmatprep.subr.mxu1 %v162_v25  ;;  %232 = vmatpush1.msra.mxu0 %v97_v26  ;;  %v154_v41 = vld [vmem:[#allocation5 + $0x258] sm:$0xff]  ;;  %v89_v42 = vld [vmem:[#allocation5 + $0x50] sm:$0xff]  ;;  %v88_v44 = vld [vmem:[#allocation5 + $0x48] sm:$0xff] }
  0x2c   :  { %351 = vmatpush1.msra.mxu1 %v161_v27  ;;  %233 = vmatprep.subr.mxu0 %v96_v28  ;;  %v153_v43 = vld [vmem:[#allocation5 + $0x250] sm:$0xff]  ;;  %v152_v45 = vld [vmem:[#allocation5 + $0x248] sm:$0xff]  ;;  %v87_v46 = vld [vmem:[#allocation5 + $0x40] sm:$0xff] }
  0x2d   :  { %352 = vmatprep.subr.mxu1 %v160_v29  ;;  %234 = vmatpush1.msra.mxu0 %v95_v30  ;;  %v151_v47 = vld [vmem:[#allocation5 + $0x240] sm:$0xff]  ;;  %v86_v48 = vld [vmem:[#allocation5 + $0x38] sm:$0xff]  ;;  %v85_v50 = vld [vmem:[#allocation5 + $0x30] sm:$0xff] }
  0x2e   :  { %353 = vmatpush1.msra.mxu1 %v159_v31  ;;  %235 = vmatprep.subr.mxu0 %v94_v32  ;;  %v150_v49 = vld [vmem:[#allocation5 + $0x238] sm:$0xff]  ;;  %v149_v51 = vld [vmem:[#allocation5 + $0x230] sm:$0xff]  ;;  %v84_v52 = vld [vmem:[#allocation5 + $0x28] sm:$0xff] }
  0x2f   :  { %354 = vmatprep.subr.mxu1 %v158_v33  ;;  %236 = vmatpush1.msra.mxu0 %v93_v34  ;;  %v148_v53 = vld [vmem:[#allocation5 + $0x228] sm:$0xff]  ;;  %v83_v54 = vld [vmem:[#allocation5 + $0x20] sm:$0xff]  ;;  %v82_v56 = vld [vmem:[#allocation5 + $0x18] sm:$0xff] }
  0x30   :  { %355 = vmatpush1.msra.mxu1 %v157_v35  ;;  %237 = vmatprep.subr.mxu0 %v92_v36  ;;  %v147_v55 = vld [vmem:[#allocation5 + $0x220] sm:$0xff]  ;;  %v146_v57 = vld [vmem:[#allocation5 + $0x218] sm:$0xff]  ;;  %v81_v58 = vld [vmem:[#allocation5 + $0x10] sm:$0xff] }
  0x31   :  { %356 = vmatprep.subr.mxu1 %v156_v37  ;;  %238 = vmatpush1.msra.mxu0 %v91_v38  ;;  %v145_v59 = vld [vmem:[#allocation5 + $0x210] sm:$0xff]  ;;  %v80_v60 = vld [vmem:[#allocation5 + $0x8] sm:$0xff]  ;;  %v79_v62 = vld [vmem:[#allocation5] sm:$0xff] }
  0x32   :  { %357 = vmatpush1.msra.mxu1 %v155_v39  ;;  %239 = vmatprep.subr.mxu0 %v90_v40  ;;  %v144_v61 = vld [vmem:[#allocation5 + $0x208] sm:$0xff]  ;;  %v143_v63 = vld [vmem:[#allocation5 + $0x200] sm:$0xff]  ;;  %v142_v0 = vld [vmem:[#allocation5 + $0x1f8] sm:$0xff] }
  0x33   :  { %358 = vmatprep.subr.mxu1 %v154_v41  ;;  %240 = vmatpush1.msra.mxu0 %v89_v42  ;;  %v206_v1 = vld [vmem:[#allocation5 + $0x3f8] sm:$0xff]  ;;  %v141_v2 = vld [vmem:[#allocation5 + $0x1f0] sm:$0xff]  ;;  %v140_v4 = vld [vmem:[#allocation5 + $0x1e8] sm:$0xff] }
  0x34   :  { %359 = vmatpush1.msra.mxu1 %v153_v43  ;;  %241 = vmatprep.subr.mxu0 %v88_v44  ;;  %v205_v3 = vld [vmem:[#allocation5 + $0x3f0] sm:$0xff]  ;;  %v204_v5 = vld [vmem:[#allocation5 + $0x3e8] sm:$0xff]  ;;  %v139_v6 = vld [vmem:[#allocation5 + $0x1e0] sm:$0xff] }
  0x35   :  { %360 = vmatprep.subr.mxu1 %v152_v45  ;;  %242 = vmatpush1.msra.mxu0 %v87_v46  ;;  %v203_v7 = vld [vmem:[#allocation5 + $0x3e0] sm:$0xff]  ;;  %v138_v8 = vld [vmem:[#allocation5 + $0x1d8] sm:$0xff]  ;;  %v137_v10 = vld [vmem:[#allocation5 + $0x1d0] sm:$0xff] }
  0x36   :  { %361 = vmatpush1.msra.mxu1 %v151_v47  ;;  %243 = vmatprep.subr.mxu0 %v86_v48  ;;  %v202_v9 = vld [vmem:[#allocation5 + $0x3d8] sm:$0xff]  ;;  %v201_v11 = vld [vmem:[#allocation5 + $0x3d0] sm:$0xff]  ;;  %v136_v12 = vld [vmem:[#allocation5 + $0x1c8] sm:$0xff] }
  0x37   :  { %362 = vmatprep.subr.mxu1 %v150_v49  ;;  %244 = vmatpush1.msra.mxu0 %v85_v50  ;;  %v200_v13 = vld [vmem:[#allocation5 + $0x3c8] sm:$0xff]  ;;  %v135_v14 = vld [vmem:[#allocation5 + $0x1c0] sm:$0xff]  ;;  %v134_v16 = vld [vmem:[#allocation5 + $0x1b8] sm:$0xff] }
  0x38   :  { %363 = vmatpush1.msra.mxu1 %v149_v51  ;;  %245 = vmatprep.subr.mxu0 %v84_v52  ;;  %v199_v15 = vld [vmem:[#allocation5 + $0x3c0] sm:$0xff]  ;;  %v198_v17 = vld [vmem:[#allocation5 + $0x3b8] sm:$0xff]  ;;  %v133_v18 = vld [vmem:[#allocation5 + $0x1b0] sm:$0xff] }
  0x39   :  { %364 = vmatprep.subr.mxu1 %v148_v53  ;;  %246 = vmatpush1.msra.mxu0 %v83_v54  ;;  %v197_v19 = vld [vmem:[#allocation5 + $0x3b0] sm:$0xff]  ;;  %v132_v20 = vld [vmem:[#allocation5 + $0x1a8] sm:$0xff]  ;;  %v131_v22 = vld [vmem:[#allocation5 + $0x1a0] sm:$0xff] }
  0x3a   :  { %365 = vmatpush1.msra.mxu1 %v147_v55  ;;  %247 = vmatprep.subr.mxu0 %v82_v56  ;;  %v196_v21 = vld [vmem:[#allocation5 + $0x3a8] sm:$0xff]  ;;  %v195_v23 = vld [vmem:[#allocation5 + $0x3a0] sm:$0xff]  ;;  %v130_v24 = vld [vmem:[#allocation5 + $0x198] sm:$0xff] }
  0x3b   :  { %366 = vmatprep.subr.mxu1 %v146_v57  ;;  %248 = vmatpush1.msra.mxu0 %v81_v58  ;;  %v194_v25 = vld [vmem:[#allocation5 + $0x398] sm:$0xff]  ;;  %v129_v26 = vld [vmem:[#allocation5 + $0x190] sm:$0xff]  ;;  %v128_v28 = vld [vmem:[#allocation5 + $0x188] sm:$0xff] }
  0x3c   :  { %367 = vmatpush1.msra.mxu1 %v145_v59  ;;  %249 = vmatprep.subr.mxu0 %v80_v60  ;;  %v193_v27 = vld [vmem:[#allocation5 + $0x390] sm:$0xff]  ;;  %v192_v29 = vld [vmem:[#allocation5 + $0x388] sm:$0xff]  ;;  %v127_v30 = vld [vmem:[#allocation5 + $0x180] sm:$0xff] }
  0x3d   :  { %368 = vmatprep.subr.mxu1 %v144_v61  ;;  %250 = vmatpush1.msra.mxu0 %v79_v62  ;;  %v191_v31 = vld [vmem:[#allocation5 + $0x380] sm:$0xff]  ;;  %v126_v32 = vld [vmem:[#allocation5 + $0x178] sm:$0xff]  ;;  %v125_v34 = vld [vmem:[#allocation5 + $0x170] sm:$0xff] }
  0x3e   :  { %369 = vmatpush1.msra.mxu1 %v143_v63  ;;  %251 = vmatprep.subr.mxu0 %v142_v0  ;;  %v190_v33 = vld [vmem:[#allocation5 + $0x378] sm:$0xff]  ;;  %v189_v35 = vld [vmem:[#allocation5 + $0x370] sm:$0xff]  ;;  %v124_v36 = vld [vmem:[#allocation5 + $0x168] sm:$0xff] }
  0x3f   :  { %370 = vmatprep.subr.mxu1 %v206_v1  ;;  %252 = vmatpush2.msra.mxu0 %v141_v2  ;;  %v188_v37 = vld [vmem:[#allocation5 + $0x368] sm:$0xff]  ;;  %v123_v38 = vld [vmem:[#allocation5 + $0x160] sm:$0xff]  ;;  %v122_v40 = vld [vmem:[#allocation5 + $0x158] sm:$0xff] }
  0x40   :  { %371 = vmatpush2.msra.mxu1 %v205_v3  ;;  %253 = vmatprep.subr.mxu0 %v140_v4  ;;  %v187_v39 = vld [vmem:[#allocation5 + $0x360] sm:$0xff]  ;;  %v186_v41 = vld [vmem:[#allocation5 + $0x358] sm:$0xff]  ;;  %v121_v42 = vld [vmem:[#allocation5 + $0x150] sm:$0xff] }
  0x41   :  { %372 = vmatprep.subr.mxu1 %v204_v5  ;;  %254 = vmatpush2.msra.mxu0 %v139_v6  ;;  %v185_v43 = vld [vmem:[#allocation5 + $0x350] sm:$0xff]  ;;  %v120_v44 = vld [vmem:[#allocation5 + $0x148] sm:$0xff]  ;;  %v119_v46 = vld [vmem:[#allocation5 + $0x140] sm:$0xff] }
  0x42   :  { %373 = vmatpush2.msra.mxu1 %v203_v7  ;;  %255 = vmatprep.subr.mxu0 %v138_v8  ;;  %v184_v45 = vld [vmem:[#allocation5 + $0x348] sm:$0xff]  ;;  %v183_v47 = vld [vmem:[#allocation5 + $0x340] sm:$0xff]  ;;  %v118_v48 = vld [vmem:[#allocation5 + $0x138] sm:$0xff] }
  0x43   :  { %374 = vmatprep.subr.mxu1 %v202_v9  ;;  %256 = vmatpush2.msra.mxu0 %v137_v10  ;;  %v182_v49 = vld [vmem:[#allocation5 + $0x338] sm:$0xff]  ;;  %v117_v50 = vld [vmem:[#allocation5 + $0x130] sm:$0xff]  ;;  %v116_v52 = vld [vmem:[#allocation5 + $0x128] sm:$0xff] }
  0x44   :  { %375 = vmatpush2.msra.mxu1 %v201_v11  ;;  %257 = vmatprep.subr.mxu0 %v136_v12  ;;  %v181_v51 = vld [vmem:[#allocation5 + $0x330] sm:$0xff]  ;;  %v180_v53 = vld [vmem:[#allocation5 + $0x328] sm:$0xff]  ;;  %v115_v54 = vld [vmem:[#allocation5 + $0x120] sm:$0xff] }
  0x45   :  { %376 = vmatprep.subr.mxu1 %v200_v13  ;;  %258 = vmatpush2.msra.mxu0 %v135_v14  ;;  %v179_v55 = vld [vmem:[#allocation5 + $0x320] sm:$0xff]  ;;  %v114_v56 = vld [vmem:[#allocation5 + $0x118] sm:$0xff]  ;;  %v113_v58 = vld [vmem:[#allocation5 + $0x110] sm:$0xff] }
  0x46   :  { %377 = vmatpush2.msra.mxu1 %v199_v15  ;;  %259 = vmatprep.subr.mxu0 %v134_v16  ;;  %v178_v57 = vld [vmem:[#allocation5 + $0x318] sm:$0xff]  ;;  %v177_v59 = vld [vmem:[#allocation5 + $0x310] sm:$0xff]  ;;  %v112_v60 = vld [vmem:[#allocation5 + $0x108] sm:$0xff] }
  0x47   :  { %378 = vmatprep.subr.mxu1 %v198_v17  ;;  %260 = vmatpush2.msra.mxu0 %v133_v18  ;;  %v176_v61 = vld [vmem:[#allocation5 + $0x308] sm:$0xff]  ;;  %v111_v62 = vld [vmem:[#allocation5 + $0x100] sm:$0xff]  ;;  %v46_v1 = vld [vmem:[#allocation2 + $0x18] sm:$0xff] }
  0x48   :  { %379 = vmatpush2.msra.mxu1 %v197_v19  ;;  %261 = vmatprep.subr.mxu0 %v132_v20  ;;  %v44_v63 = vld [vmem:[#allocation2 + $0x8] sm:$0xff]  ;;  %v175_v0 = vld [vmem:[#allocation5 + $0x300] sm:$0xff]  ;;  %v45_v3 = vld [vmem:[#allocation2 + $0x10] sm:$0xff] }
  0x49   :  { %380 = vmatprep.subr.mxu1 %v196_v21  ;;  %262 = vmatpush2.msra.mxu0 %v131_v22  ;;  %v43_v2 = vld [vmem:[#allocation2] sm:$0xff]  ;;  %v48_v4 = vld [vmem:[#allocation2 + $0x28] sm:$0xff]  ;;  %v50_v5 = vld [vmem:[#allocation2 + $0x38] sm:$0xff] }
  0x4a   :  { %381 = vmatpush2.msra.mxu1 %v195_v23  ;;  %263 = vmatprep.subr.mxu0 %v130_v24  ;;  %v47_v6 = vld [vmem:[#allocation2 + $0x20] sm:$0xff]  ;;  %v49_v7 = vld [vmem:[#allocation2 + $0x30] sm:$0xff]  ;;  %v52_v8 = vld [vmem:[#allocation2 + $0x48] sm:$0xff] }
  0x4b   :  { %382 = vmatprep.subr.mxu1 %v194_v25  ;;  %264 = vmatpush2.msra.mxu0 %v129_v26  ;;  %v54_v9 = vld [vmem:[#allocation2 + $0x58] sm:$0xff]  ;;  %v51_v10 = vld [vmem:[#allocation2 + $0x40] sm:$0xff]  ;;  %v53_v11 = vld [vmem:[#allocation2 + $0x50] sm:$0xff] }
  0x4c   :  { %383 = vmatpush2.msra.mxu1 %v193_v27  ;;  %265 = vmatprep.subr.mxu0 %v128_v28  ;;  %v56_v12 = vld [vmem:[#allocation2 + $0x68] sm:$0xff]  ;;  %v58_v13 = vld [vmem:[#allocation2 + $0x78] sm:$0xff]  ;;  %v55_v14 = vld [vmem:[#allocation2 + $0x60] sm:$0xff] }
  0x4d   :  { %384 = vmatprep.subr.mxu1 %v192_v29  ;;  %266 = vmatpush2.msra.mxu0 %v127_v30  ;;  %v57_v15 = vld [vmem:[#allocation2 + $0x70] sm:$0xff]  ;;  %v60_v16 = vld [vmem:[#allocation2 + $0x88] sm:$0xff]  ;;  %v62_v17 = vld [vmem:[#allocation2 + $0x98] sm:$0xff] }
  0x4e   :  { %385 = vmatpush2.msra.mxu1 %v191_v31  ;;  %267 = vmatprep.subr.mxu0 %v126_v32  ;;  %v59_v18 = vld [vmem:[#allocation2 + $0x80] sm:$0xff]  ;;  %v61_v19 = vld [vmem:[#allocation2 + $0x90] sm:$0xff]  ;;  %v64_v20 = vld [vmem:[#allocation2 + $0xa8] sm:$0xff] }
  0x4f   :  { %386 = vmatprep.subr.mxu1 %v190_v33  ;;  %268 = vmatpush2.msra.mxu0 %v125_v34  ;;  %v66_v21 = vld [vmem:[#allocation2 + $0xb8] sm:$0xff]  ;;  %v63_v22 = vld [vmem:[#allocation2 + $0xa0] sm:$0xff]  ;;  %v65_v23 = vld [vmem:[#allocation2 + $0xb0] sm:$0xff] }
  0x50   :  { %387 = vmatpush2.msra.mxu1 %v189_v35  ;;  %269 = vmatprep.subr.mxu0 %v124_v36  ;;  %v68_v24 = vld [vmem:[#allocation2 + $0xc8] sm:$0xff]  ;;  %v70_v25 = vld [vmem:[#allocation2 + $0xd8] sm:$0xff]  ;;  %v67_v26 = vld [vmem:[#allocation2 + $0xc0] sm:$0xff]  ;;  %v209_v36 = vlaneseq }
  0x51   :  { %388 = vmatprep.subr.mxu1 %v188_v37  ;;  %270 = vmatpush2.msra.mxu0 %v123_v38  ;;  %v69_v27 = vld [vmem:[#allocation2 + $0xd0] sm:$0xff]  ;;  %v72_v28 = vld [vmem:[#allocation2 + $0xe8] sm:$0xff]  ;;  %v74_v29 = vld [vmem:[#allocation2 + $0xf8] sm:$0xff] }
  0x52   :  { %389 = vmatpush2.msra.mxu1 %v187_v39  ;;  %271 = vmatprep.subr.mxu0 %v122_v40  ;;  %v71_v30 = vld [vmem:[#allocation2 + $0xe0] sm:$0xff]  ;;  %v73_v31 = vld [vmem:[#allocation2 + $0xf0] sm:$0xff]  ;;  %v76_v32 = vld [vmem:[#allocation2 + $0x108] sm:$0xff]  ;;  %v210_v37 = vshrl.u32 %v209_v36, 7 }
  0x53   :  { %390 = vmatprep.subr.mxu1 %v186_v41  ;;  %272 = vmatpush2.msra.mxu0 %v121_v42  ;;  %v78_v33 = vld [vmem:[#allocation2 + $0x118] sm:$0xff]  ;;  %v75_v34 = vld [vmem:[#allocation2 + $0x100] sm:$0xff]  ;;  %v77_v35 = vld [vmem:[#allocation2 + $0x110] sm:$0xff] }
  0x54   :  { %391 = vmatpush2.msra.mxu1 %v185_v43  ;;  %273 = vmatprep.subr.mxu0 %v120_v44  ;;  %v211_v38 = vsub.s32 0, %v210_v37  ;;  %v207_v39 = vld [vmem:[%s921_s2] sm:$0x3]  ;;  %v215_v40 = vsub.s32 1, %v210_v37  ;;  %s752_s2 = smov [#allocation7]  }
  0x55   :  { %392 = vmatprep.subr.mxu1 %v184_v45  ;;  %274 = vmatpush2.msra.mxu0 %v119_v46  ;;  %s624_s26 = sshll.u32 %s752_s2, 4  ;;  %s625_s26 = int_to_ptr.vmem [resolvable:$true] %s624_s26 }
  0x56   :  { %393 = vmatpush2.msra.mxu1 %v183_v47  ;;  %275 = vmatprep.subr.mxu0 %v118_v48  ;;  %v785_v41 = vrot.slane %v207_v39, %v211_v38  ;;  %v787_v42 = vrot.slane %v207_v39, %v215_v40  ;;  %s720_s27 = scalar_lea.vmem %s625_s26, 2304  ;;  %p725_p11 = scmp.lt.s32.totalorder %s625_s26, %s625_s26 }
  0x57   :  { %394 = vmatprep.subr.mxu1 %v182_v49  ;;  %276 = vmatpush2.msra.mxu0 %v117_v50  ;;  %p721_p10 = scmp.ne.s32.totalorder %s625_s26, %s720_s27  ;;  %p726_p12 = scmp.lt.s32.totalorder %s720_s27, %s720_s27 }
  0x58   :  { %395 = vmatpush2.msra.mxu1 %v181_v51  ;;  %277 = vmatprep.subr.mxu0 %v116_v52 }
  0x59   :  { %396 = vmatprep.subr.mxu1 %v180_v53  ;;  %278 = vmatpush2.msra.mxu0 %v115_v54  ;;  %p727_p13 = por %p726_p12, %p725_p11 }
  0x5a   :  { %397 = vmatpush2.msra.mxu1 %v179_v55  ;;  %279 = vmatprep.subr.mxu0 %v114_v56 }
  0x5b   :  { %398 = vmatprep.subr.mxu1 %v178_v57  ;;  %280 = vmatpush2.msra.mxu0 %v113_v58  ;;  %p728_p0 = pnand %p727_p13, %p721_p10 }
  0x5c   :  { %399 = vmatpush2.msra.mxu1 %v177_v59  ;;  %281 = vmatprep.subr.mxu0 %v112_v60 }
  0x5d   :  { %400 = vmatprep.subr.mxu1 %v176_v61  ;;  %282 = vmatpush2.msra.mxu0 %v111_v62 }
  0x5e   :  { %283 = vmatprep.mubr.f32.mxu0 %v44_v63  ;;  %401 = vmatpush2.msra.mxu1 %v175_v0 }
  0x5f   :  { %402 = vmatprep.mubr.f32.mxu1 %v46_v1  ;;  %284 = vmatmul.mubr.f32.vlgmr.msra.gmra.mxu0 %v43_v2 }
  0x60   :  { %403 = vmatmul.mubr.f32.vlgmr.msra.gmra.mxu1 %v45_v3  ;;  %289 = vmatprep.mubr.f32.mxu0 %v48_v4 }
  0x61   :  { %408 = vmatprep.mubr.f32.mxu1 %v50_v5 }
  0x63   :  { %290 = vmatmul.mubr.f32.gmra.mxu0 %v47_v6 }
  0x64   :  { %409 = vmatmul.mubr.f32.gmra.mxu1 %v49_v7  ;;  %295 = vmatprep.mubr.f32.mxu0 %v52_v8 }
  0x65   :  { %414 = vmatprep.mubr.f32.mxu1 %v54_v9 }
  0x67   :  { %296 = vmatmul.mubr.f32.gmra.mxu0 %v51_v10 }
  0x68   :  { %415 = vmatmul.mubr.f32.gmra.mxu1 %v53_v11  ;;  %301 = vmatprep.mubr.f32.mxu0 %v56_v12 }
  0x69   :  { %420 = vmatprep.mubr.f32.mxu1 %v58_v13 }
  0x6b   :  { %302 = vmatmul.mubr.f32.gmra.mxu0 %v55_v14 }
  0x6c   :  { %421 = vmatmul.mubr.f32.gmra.mxu1 %v57_v15  ;;  %307 = vmatprep.mubr.f32.mxu0 %v60_v16 }
  0x6d   :  { %426 = vmatprep.mubr.f32.mxu1 %v62_v17 }
  0x6f   :  { %308 = vmatmul.mubr.f32.gmra.mxu0 %v59_v18 }
  0x70   :  { %427 = vmatmul.mubr.f32.gmra.mxu1 %v61_v19  ;;  %313 = vmatprep.mubr.f32.mxu0 %v64_v20 }
  0x71   :  { %432 = vmatprep.mubr.f32.mxu1 %v66_v21 }
  0x73   :  { %314 = vmatmul.mubr.f32.gmra.mxu0 %v63_v22 }
  0x74   :  { %433 = vmatmul.mubr.f32.gmra.mxu1 %v65_v23  ;;  %319 = vmatprep.mubr.f32.mxu0 %v68_v24 }
  0x75   :  { %438 = vmatprep.mubr.f32.mxu1 %v70_v25 }
  0x77   :  { %320 = vmatmul.mubr.f32.gmra.mxu0 %v67_v26 }
  0x78   :  { %439 = vmatmul.mubr.f32.gmra.mxu1 %v69_v27  ;;  %325 = vmatprep.mubr.f32.mxu0 %v72_v28 }
  0x79   :  { %444 = vmatprep.mubr.f32.mxu1 %v74_v29 }
  0x7b   :  { %326 = vmatmul.mubr.f32.gmra.mxu0 %v71_v30 }
  0x7c   :  { %445 = vmatmul.mubr.f32.gmra.mxu1 %v73_v31  ;;  %331 = vmatprep.mubr.f32.mxu0 %v76_v32 }
  0x7d   :  { %450 = vmatprep.mubr.f32.mxu1 %v78_v33 }
  0x7f   :  { %332 = vmatmul.mubr.f32.gmra.mxu0 %v75_v34 }
  0x80   :  { %451 = vmatmul.mubr.f32.gmra.mxu1 %v77_v35 }
 0x11f   :  { %v285_v43 = vpop.f32.mrf.mxu0 }
 0x120   :  { %v404_v44 = vpop.f32.mrf.mxu1  ;;  %v286_v45 = vadd.f32 %v285_v43, %v785_v41 }
 0x121   :  { %v287_v46 = vpop.f32.mrf.mxu0 }
 0x122   :  { %v406_v47 = vpop.f32.mrf.mxu1  ;;  %v790_v48 = vadd.f32 %v404_v44, %v286_v45  ;;  %v288_v49 = vadd.f32 %v287_v46, %v787_v42 }
 0x123   :  { %v291_v50 = vpop.f32.mrf.mxu0 }
 0x124   :  { %v410_v51 = vpop.f32.mrf.mxu1  ;;  %v793_v52 = vadd.f32 %v406_v47, %v288_v49  ;;  %v292_v53 = vadd.f32 %v291_v50, %v785_v41  ;;  %v457_v58 = vmul.f32 %v790_v48, %v790_v48 }
 0x125   :  { %v293_v54 = vpop.f32.mrf.mxu0 }
 0x126   :  { %v412_v55 = vpop.f32.mrf.mxu1  ;;  %v796_v56 = vadd.f32 %v410_v51, %v292_v53  ;;  %v294_v57 = vadd.f32 %v293_v54, %v787_v42  ;;  %v458_v59 = vmul.f32 %v793_v52, %v793_v52 }
 0x127   :  { %v297_v60 = vpop.f32.mrf.mxu0 }
 0x128   :  { %v416_v61 = vpop.f32.mrf.mxu1  ;;  %v803_v62 = vadd.f32 %v412_v55, %v294_v57  ;;  %v298_v63 = vadd.f32 %v297_v60, %v785_v41  ;;  %v475_v0 = vadd.f32 %v458_v59, %v457_v58  ;;  %v459_v3 = vmul.f32 %v796_v56, %v796_v56 }
 0x129   :  { %v299_v1 = vpop.f32.mrf.mxu0 }
 0x12a   :  { %v418_v2 = vpop.f32.mrf.mxu1  ;;  %v460_v4 = vmul.f32 %v803_v62, %v803_v62  ;;  %v810_v5 = vadd.f32 %v416_v61, %v298_v63  ;;  %v300_v6 = vadd.f32 %v299_v1, %v787_v42  ;;  %476 = vadd.xlane.f32.xlu0 %v475_v0 }
 0x12b   :  { %v303_v7 = vpop.f32.mrf.mxu0 }
 0x12c   :  { %v422_v8 = vpop.f32.mrf.mxu1  ;;  %v813_v9 = vadd.f32 %v418_v2, %v300_v6  ;;  %v304_v10 = vadd.f32 %v303_v7, %v785_v41  ;;  %v478_v11 = vadd.f32 %v460_v4, %v459_v3  ;;  %v461_v16 = vmul.f32 %v810_v5, %v810_v5 }
 0x12d   :  { %v305_v12 = vpop.f32.mrf.mxu0 }
 0x12e   :  { %v424_v13 = vpop.f32.mrf.mxu1  ;;  %v816_v14 = vadd.f32 %v422_v8, %v304_v10  ;;  %v306_v15 = vadd.f32 %v305_v12, %v787_v42  ;;  %479 = vadd.xlane.f32.xlu0 %v478_v11  ;;  %v462_v17 = vmul.f32 %v813_v9, %v813_v9 }
 0x12f   :  { %v309_v18 = vpop.f32.mrf.mxu0 }
 0x130   :  { %v428_v19 = vpop.f32.mrf.mxu1  ;;  %v823_v20 = vadd.f32 %v424_v13, %v306_v15  ;;  %v310_v21 = vadd.f32 %v309_v18, %v785_v41  ;;  %v481_v22 = vadd.f32 %v462_v17, %v461_v16  ;;  %v463_v25 = vmul.f32 %v816_v14, %v816_v14 }
 0x131   :  { %v311_v23 = vpop.f32.mrf.mxu0 }
 0x132   :  { %v430_v24 = vpop.f32.mrf.mxu1  ;;  %v464_v26 = vmul.f32 %v823_v20, %v823_v20  ;;  %v830_v27 = vadd.f32 %v428_v19, %v310_v21  ;;  %v312_v28 = vadd.f32 %v311_v23, %v787_v42  ;;  %482 = vadd.xlane.f32.xlu1 %v481_v22 }
 0x133   :  { %v315_v29 = vpop.f32.mrf.mxu0 }
 0x134   :  { %v434_v30 = vpop.f32.mrf.mxu1  ;;  %v833_v31 = vadd.f32 %v430_v24, %v312_v28  ;;  %v316_v32 = vadd.f32 %v315_v29, %v785_v41  ;;  %v484_v33 = vadd.f32 %v464_v26, %v463_v25  ;;  %v465_v36 = vmul.f32 %v830_v27, %v830_v27 }
 0x135   :  { %v317_v34 = vpop.f32.mrf.mxu0 }
 0x136   :  { %v436_v35 = vpop.f32.mrf.mxu1  ;;  %v466_v37 = vmul.f32 %v833_v31, %v833_v31  ;;  %v840_v38 = vadd.f32 %v434_v30, %v316_v32  ;;  %v318_v39 = vadd.f32 %v317_v34, %v787_v42  ;;  %485 = vadd.xlane.f32.xlu1 %v484_v33 }
 0x137   :  { %v321_v40 = vpop.f32.mrf.mxu0 }
 0x138   :  { %v440_v43 = vpop.f32.mrf.mxu1  ;;  %v843_v44 = vadd.f32 %v436_v35, %v318_v39  ;;  %v322_v45 = vadd.f32 %v321_v40, %v785_v41  ;;  %v487_v46 = vadd.f32 %v466_v37, %v465_v36  ;;  %v467_v50 = vmul.f32 %v840_v38, %v840_v38 }
 0x139   :  { %v323_v47 = vpop.f32.mrf.mxu0 }
 0x13a   :  { %v442_v49 = vpop.f32.mrf.mxu1  ;;  %v468_v51 = vmul.f32 %v843_v44, %v843_v44  ;;  %v850_v53 = vadd.f32 %v440_v43, %v322_v45  ;;  %v324_v54 = vadd.f32 %v323_v47, %v787_v42  ;;  %488 = vadd.xlane.f32.xlu0 %v487_v46 }
 0x13b   :  { %v327_v55 = vpop.f32.mrf.mxu0 }
 0x13c   :  { %v446_v57 = vpop.f32.mrf.mxu1  ;;  %v853_v58 = vadd.f32 %v442_v49, %v324_v54  ;;  %v328_v59 = vadd.f32 %v327_v55, %v785_v41  ;;  %v490_v60 = vadd.f32 %v468_v51, %v467_v50  ;;  %v469_v0 = vmul.f32 %v850_v53, %v850_v53 }
 0x13d   :  { %v329_v61 = vpop.f32.mrf.mxu0 }
 0x13e   :  { %v448_v63 = vpop.f32.mrf.mxu1  ;;  %v470_v1 = vmul.f32 %v853_v58, %v853_v58  ;;  %v860_v2 = vadd.f32 %v446_v57, %v328_v59  ;;  %v330_v3 = vadd.f32 %v329_v61, %v787_v42  ;;  %491 = vadd.xlane.f32.xlu1 %v490_v60 }
 0x13f   :  { %v333_v4 = vpop.f32.mrf.mxu0 }
 0x140   :  { %v452_v6 = vpop.f32.mrf.mxu1  ;;  %v863_v7 = vadd.f32 %v448_v63, %v330_v3  ;;  %v334_v8 = vadd.f32 %v333_v4, %v785_v41  ;;  %v493_v10 = vadd.f32 %v470_v1, %v469_v0  ;;  %v471_v12 = vmul.f32 %v860_v2, %v860_v2 }
 0x141   :  { %v335_v11 = vpop.f32.mrf.mxu0 }
 0x142   :  { %v472_v13 = vmul.f32 %v863_v7, %v863_v7  ;;  %v870_v15 = vadd.f32 %v452_v6, %v334_v8  ;;  %v336_v16 = vadd.f32 %v335_v11, %v787_v42  ;;  %494 = vadd.xlane.f32.xlu0 %v493_v10  ;;  %v454_v17 = vpop.f32.mrf.mxu1 }
 0x144   :  { %v873_v18 = vadd.f32 %v454_v17, %v336_v16  ;;  %v496_v19 = vadd.f32 %v472_v13, %v471_v12  ;;  %v473_v41 = vmul.f32 %v870_v15, %v870_v15 }
 0x146   :  { %v474_v21 = vmul.f32 %v873_v18, %v873_v18  ;;  %497 = vadd.xlane.f32.xlu1 %v496_v19 }
 0x148   :  { %v499_v22 = vadd.f32 %v474_v21, %v473_v41 }
 0x14a   :  { %500 = vadd.xlane.f32.xlu0 %v499_v22 }
 0x1b3   :  { %v477_v23 = vpop.xlane.xlu0 %476 }
 0x1b4   :  { %644 = vrsqrt.f32 %v477_v23  ;;  %vm504_vm0 = vcmp.eq.f32.partialorder %v477_v23, inf  ;;  %v507_v29 = vand.u32 2147483648, %v477_v23  ;;  %vm506_vm1 = vcmp.eq.f32.partialorder %v477_v23, 0.0 }
 0x1b7   :  { %v480_v24 = vpop.xlane.xlu0 %479 }
 0x1b8   :  { %646 = vrsqrt.f32 %v480_v24  ;;  %vm511_vm2 = vcmp.eq.f32.partialorder %v480_v24, inf  ;;  %v514_v37 = vand.u32 2147483648, %v480_v24  ;;  %vm513_vm3 = vcmp.eq.f32.partialorder %v480_v24, 0.0 }
 0x1bb   :  { %v483_v25 = vpop.xlane.xlu1 %482 }
 0x1bc   :  { %648 = vrsqrt.f32 %v483_v25  ;;  %vm518_vm4 = vcmp.eq.f32.partialorder %v483_v25, inf  ;;  %v521_v49 = vand.u32 2147483648, %v483_v25  ;;  %vm520_vm5 = vcmp.eq.f32.partialorder %v483_v25, 0.0 }
 0x1bf   :  { %v486_v42 = vpop.xlane.xlu1 %485 }
 0x1c0   :  { %650 = vrsqrt.f32 %v486_v42  ;;  %vm525_vm6 = vcmp.eq.f32.partialorder %v486_v42, inf  ;;  %v528_v60 = vand.u32 2147483648, %v486_v42  ;;  %vm527_vm7 = vcmp.eq.f32.partialorder %v486_v42, 0.0 }
 0x1c1   :  { %v645_v26 = vpop.eup %644 }
 0x1c2   :  { %v503_v28 = vmul.f32 %v645_v26, %v477_v23 }
 0x1c3   :  { %v489_v30 = vpop.xlane.xlu0 %488 }
 0x1c4   :  { %v505_v32 = vsel %vm504_vm0, %v477_v23, %v503_v28  ;;  %652 = vrsqrt.f32 %v489_v30  ;;  %vm532_vm8 = vcmp.eq.f32.partialorder %v489_v30, inf  ;;  %v535_v6 = vand.u32 2147483648, %v489_v30 }
 0x1c5   :  { %v647_v33 = vpop.eup %646  ;;  %v508_v34 = vsel %vm506_vm1, %v507_v29, %v505_v32  ;;  %vm534_vm9 = vcmp.eq.f32.partialorder %v489_v30, 0.0 }
 0x1c6   :  { %v565_v35 = vadd.f32 1e-08, %v508_v34  ;;  %v510_v36 = vmul.f32 %v647_v33, %v480_v24 }
 0x1c7   :  { %v492_v39 = vpop.xlane.xlu1 %491 }
 0x1c8   :  { %654 = vrcp.f32 %v565_v35  ;;  %v512_v40 = vsel %vm511_vm2, %v480_v24, %v510_v36  ;;  %vm539_vm10 = vcmp.eq.f32.partialorder %v492_v39, inf  ;;  %v542_v21 = vand.u32 2147483648, %v492_v39 }
 0x1c9   :  { %v649_v43 = vpop.eup %648  ;;  %v515_v45 = vsel %vm513_vm3, %v514_v37, %v512_v40  ;;  %656 = vrsqrt.f32 %v492_v39  ;;  %vm541_vm11 = vcmp.eq.f32.partialorder %v492_v39, 0.0 }
 0x1ca   :  { %v566_v46 = vadd.f32 1e-08, %v515_v45  ;;  %v517_v47 = vmul.f32 %v649_v43, %v483_v25 }
 0x1cb   :  { %v495_v50 = vpop.xlane.xlu0 %494 }
 0x1cc   :  { %658 = vrcp.f32 %v566_v46  ;;  %v519_v51 = vsel %vm518_vm4, %v483_v25, %v517_v47  ;;  %vm546_vm12 = vcmp.eq.f32.partialorder %v495_v50, inf  ;;  %vm548_vm13 = vcmp.eq.f32.partialorder %v495_v50, 0.0 }
 0x1cd   :  { %v651_v54 = vpop.eup %650  ;;  %v522_v55 = vsel %vm520_vm5, %v521_v49, %v519_v51  ;;  %660 = vrsqrt.f32 %v495_v50 }
 0x1ce   :  { %v567_v57 = vadd.f32 1e-08, %v522_v55  ;;  %v524_v59 = vmul.f32 %v651_v54, %v486_v42 }
 0x1cf   :  { %v879_v61 = vpop.xlane.xlu1 %497 }
 0x1d0   :  { %662 = vrcp.f32 %v567_v57  ;;  %v526_v63 = vsel %vm525_vm6, %v486_v42, %v524_v59  ;;  %vm553_vm14 = vcmp.eq.f32.partialorder %v879_v61, inf  ;;  %v556_v36 = vand.u32 2147483648, %v879_v61 }
 0x1d1   :  { %v653_v0 = vpop.eup %652  ;;  %v529_v1 = vsel %vm527_vm7, %v528_v60, %v526_v63  ;;  %664 = vrsqrt.f32 %v879_v61  ;;  %vm555_vm15 = vcmp.eq.f32.partialorder %v879_v61, 0.0 }
 0x1d2   :  { %v568_v3 = vadd.f32 1e-08, %v529_v1  ;;  %v531_v4 = vmul.f32 %v653_v0, %v489_v30 }
 0x1d3   :  { %v882_v8 = vpop.xlane.xlu0 %500 }
 0x1d4   :  { %666 = vrcp.f32 %v568_v3  ;;  %v533_v10 = vsel %vm532_vm8, %v489_v30, %v531_v4  ;;  %vm560_vm0 = vcmp.eq.f32.partialorder %v882_v8, inf  ;;  %v563_v47 = vand.u32 2147483648, %v882_v8 }
 0x1d5   :  { %v655_v11 = vpop.eup %654  ;;  %v536_v12 = vsel %vm534_vm9, %v535_v6, %v533_v10  ;;  %668 = vrsqrt.f32 %v882_v8  ;;  %vm562_vm1 = vcmp.eq.f32.partialorder %v882_v8, 0.0 }
 0x1d6   :  { %v657_v13 = vpop.eup %656  ;;  %v583_v16 = vmul.f32 %v655_v11, %v790_v48  ;;  %v584_v17 = vmul.f32 %v655_v11, %v793_v52  ;;  %v569_v19 = vadd.f32 1e-08, %v536_v12  ;;  %v549_v52 = vand.u32 2147483648, %v495_v50 }
 0x1d7   :  { %v538_v41 = vmul.f32 %v657_v13, %v492_v39 }
 0x1d8   :  { %601 = vst [vmem:[#allocation7] sm:$0xff] %v583_v16  ;;  %602 = vst [vmem:[#allocation7 + $0x8] sm:$0xff] %v584_v17  ;;  %670 = vrcp.f32 %v569_v19 }
 0x1d9   :  { %v659_v22 = vpop.eup %658  ;;  %v540_v23 = vsel %vm539_vm10, %v492_v39, %v538_v41 }
 0x1da   :  { %v661_v24 = vpop.eup %660  ;;  %v585_v25 = vmul.f32 %v659_v22, %v796_v56  ;;  %v586_v42 = vmul.f32 %v659_v22, %v803_v62  ;;  %v543_v26 = vsel %vm541_vm11, %v542_v21, %v540_v23 }
 0x1db   :  { %v570_v28 = vadd.f32 1e-08, %v543_v26  ;;  %v545_v48 = vmul.f32 %v661_v24, %v495_v50 }
 0x1dc   :  { %603 = vst [vmem:[#allocation7 + $0x10] sm:$0xff] %v585_v25  ;;  %604 = vst [vmem:[#allocation7 + $0x18] sm:$0xff] %v586_v42 }
 0x1dd   :  { %v663_v29 = vpop.eup %662  ;;  %672 = vrcp.f32 %v570_v28  ;;  %v547_v30 = vsel %vm546_vm12, %v495_v50, %v545_v48 }
 0x1de   :  { %v665_v32 = vpop.eup %664  ;;  %v587_v33 = vmul.f32 %v663_v29, %v810_v5  ;;  %v588_v34 = vmul.f32 %v663_v29, %v813_v9  ;;  %v550_v35 = vsel %vm548_vm13, %v549_v52, %v547_v30 }
 0x1df   :  { %v571_v56 = vadd.f32 1e-08, %v550_v35  ;;  %v552_v62 = vmul.f32 %v665_v32, %v879_v61 }
 0x1e0   :  { %605 = vst [vmem:[#allocation7 + $0x20] sm:$0xff] %v587_v33  ;;  %606 = vst [vmem:[#allocation7 + $0x28] sm:$0xff] %v588_v34 }
 0x1e1   :  { %v667_v37 = vpop.eup %666  ;;  %674 = vrcp.f32 %v571_v56  ;;  %v554_v39 = vsel %vm553_vm14, %v879_v61, %v552_v62 }
 0x1e2   :  { %v669_v40 = vpop.eup %668  ;;  %v589_v5 = vmul.f32 %v667_v37, %v816_v14  ;;  %v590_v9 = vmul.f32 %v667_v37, %v823_v20  ;;  %v557_v43 = vsel %vm555_vm15, %v556_v36, %v554_v39 }
 0x1e3   :  { %v572_v45 = vadd.f32 1e-08, %v557_v43  ;;  %v559_v46 = vmul.f32 %v669_v40, %v882_v8 }
 0x1e4   :  { %607 = vst [vmem:[#allocation7 + $0x30] sm:$0xff] %v589_v5  ;;  %608 = vst [vmem:[#allocation7 + $0x38] sm:$0xff] %v590_v9 }
 0x1e5   :  { %v671_v49 = vpop.eup %670  ;;  %676 = vrcp.f32 %v572_v45  ;;  %v561_v50 = vsel %vm560_vm0, %v882_v8, %v559_v46 }
 0x1e6   :  { %v591_v14 = vmul.f32 %v671_v49, %v830_v27  ;;  %v592_v20 = vmul.f32 %v671_v49, %v833_v31  ;;  %v564_v51 = vsel %vm562_vm1, %v563_v47, %v561_v50 }
 0x1e7   :  { %v573_v54 = vadd.f32 1e-08, %v564_v51 }
 0x1e8   :  { %609 = vst [vmem:[#allocation7 + $0x40] sm:$0xff] %v591_v14  ;;  %610 = vst [vmem:[#allocation7 + $0x48] sm:$0xff] %v592_v20 }
 0x1e9   :  { %678 = vrcp.f32 %v573_v54 }
 0x1ea   :  { %v673_v55 = vpop.eup %672 }
 0x1eb   :  { %v593_v57 = vmul.f32 %v673_v55, %v840_v38  ;;  %v594_v59 = vmul.f32 %v673_v55, %v843_v44 }
 0x1ed   :  { %611 = vst [vmem:[#allocation7 + $0x50] sm:$0xff] %v593_v57  ;;  %612 = vst [vmem:[#allocation7 + $0x58] sm:$0xff] %v594_v59 }
 0x1ee   :  { %v675_v60 = vpop.eup %674 }
 0x1ef   :  { %v595_v61 = vmul.f32 %v675_v60, %v850_v53  ;;  %v596_v63 = vmul.f32 %v675_v60, %v853_v58 }
 0x1f1   :  { %613 = vst [vmem:[#allocation7 + $0x60] sm:$0xff] %v595_v61  ;;  %614 = vst [vmem:[#allocation7 + $0x68] sm:$0xff] %v596_v63 }
 0x1f2   :  { %v677_v27 = vpop.eup %676 }
 0x1f3   :  { %v597_v31 = vmul.f32 %v677_v27, %v860_v2  ;;  %v598_v0 = vmul.f32 %v677_v27, %v863_v7 }
 0x1f5   :  { %615 = vst [vmem:[#allocation7 + $0x70] sm:$0xff] %v597_v31  ;;  %616 = vst [vmem:[#allocation7 + $0x78] sm:$0xff] %v598_v0 }
 0x1f6   :  { %v679_v38 = vpop.eup %678 }
 0x1f7   :  { %v599_v44 = vmul.f32 %v679_v38, %v870_v15  ;;  %v600_v1 = vmul.f32 %v679_v38, %v873_v18 }
 0x1f9   :  { %617 = vst [vmem:[#allocation7 + $0x80] sm:$0xff] %v599_v44  ;;  %618 = vst [vmem:[#allocation7 + $0x88] sm:$0xff] %v600_v1 }
 0x1fa   :  { %731 = shalt.err (!%p728_p0)
}
 0x1fb   :  { %630 = dma.vmem_to_hbm [thread:$0]  %s625_s26, 2304, %s922_s3, [#allocation4], %s750_s22, %s750_s22, %s751_s23  }
 0x1fc   :  { %744 = dma.done.wait [#allocation4], 2304  }
 0x1fd   :  { %745 = vsyncadd [#allocation4], 4294964992 }
 0x1fe   :  { %634 = vsyncpa [#allocation3], 1 }
 0x1ff   :  { %635 = vsyncpa [#allocation6], 1 }
 0x200   :  { %636 = vsyncpa [#allocation4], 1 }

</bundles_post_ra>
